<compile_context>
chip_gen: v5e
topology: v5e:2x2
jax: 0.10.0
libtpu: 0.0.40
codegen_flags: <defaults>
</compile_context>

<pallas_src>
import functools

import jax
import jax.numpy as jnp
from jax.experimental import pallas as pl
from jax.experimental.pallas import tpu as pltpu

# ---- model hyper-parameters (match the PyTorch module) ----
KERNEL_SIZES = (2, 3, 4)   # Ks
KERNEL_NUM   = 3           # Co
CLASS_NUM    = 6           # C  (6 toxicity labels)
LANE         = 128


def _round_up(a, b):
    return ((a + b - 1) // b) * b


def _time_layout(L):
    """Choose the time chunk TL, masked/computed length Lq and padded length Lp."""
    Kmax = max(KERNEL_SIZES)
    TL = 16                              # multiple of bf16 sublane packing
    Lq = _round_up(L, TL)
    while Lq // TL > 8:                  # cap static unroll at 8 time chunks
        TL *= 2
        Lq = _round_up(L, TL)
    Lp = _round_up(Lq + Kmax - 1, 8)     # room for the shifted slices, 8-aligned
    return TL, Lq, Lp, Lq // TL


def _vmem_capacity_bytes():
    try:
        return int(pltpu.get_tpu_info().vmem_capacity_bytes)
    except Exception:
        return 64 * 1024 * 1024          # conservative fallback (v7x per-core VMEM)


# --------------------------------------------------------------------------- #
# Kernel
# --------------------------------------------------------------------------- #
def kimcnn_kernel(x_ref, w_ref, b_ref, mask_ref, wfc_ref, bfc_ref, o_ref,
                  *, n_chunk, chunk, kmax):
    tn = x_ref.shape[0]
    d = x_ref.shape[2]
    cop = w_ref.shape[2]

    # running max over time; valid because ReLU output >= 0 and masked slots are 0
    feat = jnp.zeros((tn, cop), jnp.float32)

    for tc in range(n_chunk):                          # static unroll (small)
        # fused conv for all kernel sizes: im2col realized in VMEM as shifted
        # 2-D matmuls against per-offset (D, COP) weight slices; LHS is a full
        # (tn*chunk, D) slab so every MXU pass is full-height.
        acc = jnp.zeros((tn * chunk, cop), jnp.float32)
        for k in range(kmax):
            a0 = tc * chunk + k
            xk = x_ref[:, a0:a0 + chunk, :]            # (tn, chunk, d) bf16
            acc = acc + jax.lax.dot_general(
                xk.reshape(tn * chunk, d), w_ref[k],
                dimension_numbers=(((1,), (0,)), ((), ())),
                preferred_element_type=jnp.float32)
        acc = jnp.maximum(acc + b_ref[...], 0.0)       # bias + ReLU (f32)
        # zero out time positions that are out of range for each kernel size
        # (safe only because ReLU guarantees non-negative values)
        acc = acc.reshape(tn, chunk, cop) * mask_ref[tc * chunk:(tc + 1) * chunk, :][None]
        feat = jnp.maximum(feat, jnp.max(acc, axis=1))

    # dropout: identity (inference mode)
    logits = jnp.dot(feat.astype(jnp.bfloat16), wfc_ref[...],
                     preferred_element_type=jnp.float32)
    logits = logits + bfc_ref[...]                     # (tn, CP)
    o_ref[...] = jax.nn.sigmoid(logits).astype(o_ref.dtype)


# --------------------------------------------------------------------------- #
# One-time parameter packing (hoist out of the per-call forward path)
# --------------------------------------------------------------------------- #
def pack_params(params, embed_num):
    L = embed_num
    Kmax = max(KERNEL_SIZES)
    Co = KERNEL_NUM
    C = CLASS_NUM
    COP = _round_up(len(KERNEL_SIZES) * Co, LANE)
    CP = _round_up(C, LANE)
    _, Lq, _, _ = _time_layout(L)

    D = params[f"w{KERNEL_SIZES[0]}"].shape[1]

    # per-offset fused conv weights: w_off[k] is the (D, COP) slice used by the
    # k-th shifted matmul; kernel sizes shorter than Kmax get zero-padded offsets.
    w_off = jnp.zeros((Kmax, D, COP), jnp.float32)
    b_comb = jnp.zeros((1, COP), jnp.float32)
    valid = jnp.zeros((COP,), jnp.int32)               # valid conv length per channel
    for j, K in enumerate(KERNEL_SIZES):
        wK = params[f"w{K}"].astype(jnp.float32)       # (K, D, Co)
        w_off = w_off.at[:K, :, j * Co:(j + 1) * Co].set(wK)
        b_comb = b_comb.at[:, j * Co:(j + 1) * Co].set(params[f"b{K}"].astype(jnp.float32))
        valid = valid.at[j * Co:(j + 1) * Co].set(L - K + 1)
    mask = (jnp.arange(Lq, dtype=jnp.int32)[:, None] < valid[None, :]).astype(jnp.float32)

    # fc1 weight/bias, zero-padded to lane-dense shapes (weight kept bf16 for MXU)
    wfc = jnp.zeros((COP, CP), jnp.float32)
    wfc = wfc.at[:len(KERNEL_SIZES) * Co, :C].set(params["wfc"].astype(jnp.float32))
    bfc = jnp.zeros((1, CP), jnp.float32)
    bfc = bfc.at[:, :C].set(params["bfc"].astype(jnp.float32))

    return {
        "w_off": w_off.astype(jnp.bfloat16),
        "b": b_comb,
        "mask": mask,
        "wfc": wfc.astype(jnp.bfloat16),
        "bfc": bfc,
    }


# --------------------------------------------------------------------------- #
# Forward wrapper
# --------------------------------------------------------------------------- #
def kimcnn_forward(x, packed):
    N, L, D = x.shape
    Kmax = max(KERNEL_SIZES)
    if L < Kmax:
        raise ValueError(f"embed_num (L={L}) must be >= max kernel size ({Kmax})")
    Co = KERNEL_NUM
    C = CLASS_NUM
    COP = _round_up(len(KERNEL_SIZES) * Co, LANE)
    CP = _round_up(C, LANE)
    TL, Lq, Lp, nchunk = _time_layout(L)

    # raw x in bf16, time-padded only (no im2col inflation in HBM)
    xb = jnp.pad(x.astype(jnp.bfloat16), ((0, 0), (0, Lp - L), (0, 0)))

    # ---- VMEM-aware batch tile: account for input, intermediates AND output ----
    vmem_cap = _vmem_capacity_bytes()
    vmem_budget = min(vmem_cap * 3 // 4, 96 * 1024 * 1024)   # 48 MiB on v7x, 96 MiB on v5e/v6e
    fixed = (Kmax * D * COP * 2       # fused conv weight (bf16)
             + COP * 4                # conv bias (f32)
             + Lq * COP * 4           # time-validity mask (f32)
             + COP * CP * 2           # fc weight (bf16)
             + CP * 4)                # fc bias (f32)
    per_sample = (2 * Lp * D * 2      # x block, double-buffered, bf16
                  + TL * COP * 4      # live f32 chunk intermediate
                  + COP * 4           # running-max features (f32)
                  + COP * 2           # bf16 features for the FC
                  + 2 * CP * 4)       # output block, double-buffered, f32
    avail = max(vmem_budget - 2 * fixed, 16 * per_sample)
    tn = avail // (2 * per_sample)    # 2x slack for compiler temporaries / spills
    n8 = _round_up(N, 8)
    tn = max(8, min(int(tn), 1024, n8))
    if n8 >= 16:
        # guarantee >= 2 grid steps so the "parallel" axis shards across v7x's 2 TCs
        tn = min(tn, _round_up(pl.cdiv(n8, 2), 8))
    tn = max(8, (tn // 8) * 8)
    n_pad = _round_up(N, tn)
    nb = n_pad // tn
    xb = jnp.pad(xb, ((0, n_pad - N), (0, 0), (0, 0)))

    kernel = functools.partial(kimcnn_kernel, n_chunk=nchunk, chunk=TL, kmax=Kmax)

    out = pl.pallas_call(
        kernel,
        out_shape=jax.ShapeDtypeStruct((n_pad, CP), jnp.float32),
        grid=(nb,),
        in_specs=[
            pl.BlockSpec((tn, Lp, D), lambda i: (i, 0, 0)),      # raw x tile: pipelined over batch
            pl.BlockSpec((Kmax, D, COP), lambda i: (0, 0, 0)),   # per-offset conv weights (resident)
            pl.BlockSpec((1, COP), lambda i: (0, 0)),            # fused conv bias  (resident)
            pl.BlockSpec((Lq, COP), lambda i: (0, 0)),           # time-validity mask (resident)
            pl.BlockSpec((COP, CP), lambda i: (0, 0)),           # fc weight (resident)
            pl.BlockSpec((1, CP), lambda i: (0, 0)),             # fc bias   (resident)
        ],
        out_specs=pl.BlockSpec((tn, CP), lambda i: (i, 0)),
        compiler_params=pltpu.CompilerParams(
            dimension_semantics=("parallel",),
            vmem_limit_bytes=int(vmem_budget),
        ),
    )(xb, packed["w_off"], packed["b"], packed["mask"], packed["wfc"], packed["bfc"])
    return out[:N, :C]


# --------------------------------------------------------------------------- #
# Pure-JAX reference + parameter init
# --------------------------------------------------------------------------- #
def kimcnn_reference(x, params):
    """Pure-JAX f32 reference mirroring the PyTorch forward (eval-mode dropout)."""
    x = x.astype(jnp.float32)
    N, L, D = x.shape
    feats = []
    for K in KERNEL_SIZES:
        w, b = params[f"w{K}"], params[f"b{K}"]
        T = L - K + 1
        acc = sum(jnp.einsum("ntd,dc->ntc", x[:, k:k + T, :], w[k]) for k in range(K))
        acc = jnp.maximum(acc + b.reshape(1, 1, -1), 0.0)
        feats.append(jnp.max(acc, axis=1))
    feat = jnp.concatenate(feats, axis=1)
    logits = feat @ params["wfc"] + params["bfc"]
    return jax.nn.sigmoid(logits)


def init_params(key, embed_dim):
    ks = jax.random.split(key, 8)
    params = {}
    # conv weights: PyTorch layout (Co, 1, K, D) -> stored here as (K, D, Co)
    for i, K in enumerate(KERNEL_SIZES):
        params[f"w{K}"] = (0.1 * jax.random.normal(
            ks[2 * i], (K, embed_dim, KERNEL_NUM))).astype(jnp.float32)
        params[f"b{K}"] = (0.1 * jax.random.normal(
            ks[2 * i + 1], (1, KERNEL_NUM))).astype(jnp.float32)
    # fc1: PyTorch weight (C, 3*Co) -> stored pre-transposed as (3*Co, C)
    in_feat = len(KERNEL_SIZES) * KERNEL_NUM
    params["wfc"] = (0.1 * jax.random.normal(ks[6], (in_feat, CLASS_NUM))).astype(jnp.float32)
    params["bfc"] = (0.1 * jax.random.normal(ks[7], (1, CLASS_NUM))).astype(jnp.float32)
    return params


if __name__ == "__main__":
    key = jax.random.PRNGKey(0)
    k_x, k_p = jax.random.split(key)

    batch, embed_num, embed_dim = 2, 8, 32     # (N, L, D)
    x = jax.random.normal(k_x, (batch, embed_num, embed_dim), dtype=jnp.float32)
    params = init_params(k_p, embed_dim)
    packed = pack_params(params, embed_num)    # hoisted: pack once, reuse every call

    out = kimcnn_forward(x, packed)
    out = jax.block_until_ready(out)

    ref = kimcnn_reference(x, params)
    assert out.shape == (batch, CLASS_NUM)
    # bf16 inputs/weights -> loosened tolerance (accumulation is still f32 on the MXU)
    assert jnp.allclose(out, ref, atol=2e-2, rtol=2e-2), "mismatch vs pure-JAX reference"

    print("KERNEL_OK")
</pallas_src>

<mosaic_0001>
module attributes {stable_mosaic.version = 11 : i64} {
  func.func @kimcnn_kernel(%arg0: i32, %arg1: memref<8x24x32xbf16, #tpu.memory_space<vmem>>, %arg2: memref<4x32x128xbf16, #tpu.memory_space<vmem>>, %arg3: memref<1x128xf32, #tpu.memory_space<vmem>>, %arg4: memref<16x128xf32, #tpu.memory_space<vmem>>, %arg5: memref<128x128xbf16, #tpu.memory_space<vmem>>, %arg6: memref<1x128xf32, #tpu.memory_space<vmem>>, %arg7: memref<8x128xf32, #tpu.memory_space<vmem>>) attributes {dimension_semantics = [#tpu.dimension_semantics<parallel>], iteration_bounds = array<i64: 1>, scalar_prefetch = 0 : i64, scratch_operands = 0 : i64, tpu.core_type = #tpu.core_type<tc>, window_params = [{transform_indices = @transform_0, window_bounds = array<i64: 8, 24, 32>}, {pipeline_mode = #tpu.pipeline_mode<synchronous>, transform_indices = @transform_1, window_bounds = array<i64: 4, 32, 128>}, {pipeline_mode = #tpu.pipeline_mode<synchronous>, transform_indices = @transform_2, window_bounds = array<i64: 1, 128>}, {pipeline_mode = #tpu.pipeline_mode<synchronous>, transform_indices = @transform_3, window_bounds = array<i64: 16, 128>}, {pipeline_mode = #tpu.pipeline_mode<synchronous>, transform_indices = @transform_4, window_bounds = array<i64: 128, 128>}, {pipeline_mode = #tpu.pipeline_mode<synchronous>, transform_indices = @transform_5, window_bounds = array<i64: 1, 128>}, {transform_indices = @transform_6, window_bounds = array<i64: 8, 128>}]} {
    %cst = arith.constant 0.000000e+00 : f32
    %0 = vector.broadcast %cst : f32 to vector<8x128xf32>
    %cst_0 = arith.constant 0.000000e+00 : f32
    %1 = vector.broadcast %cst_0 : f32 to vector<128x128xf32>
    %c0 = arith.constant 0 : index
    %c0_1 = arith.constant 0 : index
    %c0_2 = arith.constant 0 : index
    %2 = vector.load %arg1[%c0, %c0_1, %c0_2] : memref<8x24x32xbf16, #tpu.memory_space<vmem>>, vector<8x16x32xbf16>
    %3 = vector.shape_cast %2 : vector<8x16x32xbf16> to vector<128x32xbf16>
    %c0_3 = arith.constant 0 : index
    %c0_4 = arith.constant 0 : index
    %c0_5 = arith.constant 0 : index
    %4 = vector.load %arg2[%c0_3, %c0_4, %c0_5] : memref<4x32x128xbf16, #tpu.memory_space<vmem>>, vector<1x32x128xbf16>
    %5 = vector.shape_cast %4 : vector<1x32x128xbf16> to vector<32x128xbf16>
    %cst_6 = arith.constant dense<0.000000e+00> : vector<128x128xf32>
    %6 = tpu.matmul %3, %5, %cst_6 {dimension_numbers = #tpu.dot_dimension_numbers<[1], [0], [0], [1], [0, 0, 1, 1], [], []>} : vector<128x32xbf16>, vector<32x128xbf16>, vector<128x128xf32> -> vector<128x128xf32>
    %7 = arith.addf %1, %6 : vector<128x128xf32>
    %c0_7 = arith.constant 0 : index
    %c1 = arith.constant 1 : index
    %c0_8 = arith.constant 0 : index
    %8 = vector.load %arg1[%c0_7, %c1, %c0_8] : memref<8x24x32xbf16, #tpu.memory_space<vmem>>, vector<8x16x32xbf16>
    %9 = vector.shape_cast %8 : vector<8x16x32xbf16> to vector<128x32xbf16>
    %c1_9 = arith.constant 1 : index
    %c0_10 = arith.constant 0 : index
    %c0_11 = arith.constant 0 : index
    %10 = vector.load %arg2[%c1_9, %c0_10, %c0_11] : memref<4x32x128xbf16, #tpu.memory_space<vmem>>, vector<1x32x128xbf16>
    %11 = vector.shape_cast %10 : vector<1x32x128xbf16> to vector<32x128xbf16>
    %cst_12 = arith.constant dense<0.000000e+00> : vector<128x128xf32>
    %12 = tpu.matmul %9, %11, %cst_12 {dimension_numbers = #tpu.dot_dimension_numbers<[1], [0], [0], [1], [0, 0, 1, 1], [], []>} : vector<128x32xbf16>, vector<32x128xbf16>, vector<128x128xf32> -> vector<128x128xf32>
    %13 = arith.addf %7, %12 : vector<128x128xf32>
    %c0_13 = arith.constant 0 : index
    %c2 = arith.constant 2 : index
    %c0_14 = arith.constant 0 : index
    %14 = vector.load %arg1[%c0_13, %c2, %c0_14] : memref<8x24x32xbf16, #tpu.memory_space<vmem>>, vector<8x16x32xbf16>
    %15 = vector.shape_cast %14 : vector<8x16x32xbf16> to vector<128x32xbf16>
    %c2_15 = arith.constant 2 : index
    %c0_16 = arith.constant 0 : index
    %c0_17 = arith.constant 0 : index
    %16 = vector.load %arg2[%c2_15, %c0_16, %c0_17] : memref<4x32x128xbf16, #tpu.memory_space<vmem>>, vector<1x32x128xbf16>
    %17 = vector.shape_cast %16 : vector<1x32x128xbf16> to vector<32x128xbf16>
    %cst_18 = arith.constant dense<0.000000e+00> : vector<128x128xf32>
    %18 = tpu.matmul %15, %17, %cst_18 {dimension_numbers = #tpu.dot_dimension_numbers<[1], [0], [0], [1], [0, 0, 1, 1], [], []>} : vector<128x32xbf16>, vector<32x128xbf16>, vector<128x128xf32> -> vector<128x128xf32>
    %19 = arith.addf %13, %18 : vector<128x128xf32>
    %c0_19 = arith.constant 0 : index
    %c3 = arith.constant 3 : index
    %c0_20 = arith.constant 0 : index
    %20 = vector.load %arg1[%c0_19, %c3, %c0_20] : memref<8x24x32xbf16, #tpu.memory_space<vmem>>, vector<8x16x32xbf16>
    %21 = vector.shape_cast %20 : vector<8x16x32xbf16> to vector<128x32xbf16>
    %c3_21 = arith.constant 3 : index
    %c0_22 = arith.constant 0 : index
    %c0_23 = arith.constant 0 : index
    %22 = vector.load %arg2[%c3_21, %c0_22, %c0_23] : memref<4x32x128xbf16, #tpu.memory_space<vmem>>, vector<1x32x128xbf16>
    %23 = vector.shape_cast %22 : vector<1x32x128xbf16> to vector<32x128xbf16>
    %cst_24 = arith.constant dense<0.000000e+00> : vector<128x128xf32>
    %24 = tpu.matmul %21, %23, %cst_24 {dimension_numbers = #tpu.dot_dimension_numbers<[1], [0], [0], [1], [0, 0, 1, 1], [], []>} : vector<128x32xbf16>, vector<32x128xbf16>, vector<128x128xf32> -> vector<128x128xf32>
    %25 = arith.addf %19, %24 : vector<128x128xf32>
    %c0_25 = arith.constant 0 : index
    %c0_26 = arith.constant 0 : index
    %26 = vector.load %arg3[%c0_25, %c0_26] : memref<1x128xf32, #tpu.memory_space<vmem>>, vector<1x128xf32>
    %27 = vector.broadcast %26 : vector<1x128xf32> to vector<128x128xf32>
    %28 = arith.addf %25, %27 : vector<128x128xf32>
    %cst_27 = arith.constant 0.000000e+00 : f32
    %29 = vector.broadcast %cst_27 : f32 to vector<128x128xf32>
    %30 = arith.maximumf %28, %29 : vector<128x128xf32>
    %31 = vector.shape_cast %30 : vector<128x128xf32> to vector<8x16x128xf32>
    %c0_28 = arith.constant 0 : index
    %c0_29 = arith.constant 0 : index
    %32 = vector.load %arg4[%c0_28, %c0_29] : memref<16x128xf32, #tpu.memory_space<vmem>>, vector<16x128xf32>
    %33 = vector.shape_cast %32 : vector<16x128xf32> to vector<1x16x128xf32>
    %34 = vector.broadcast %33 : vector<1x16x128xf32> to vector<8x16x128xf32>
    %35 = arith.mulf %31, %34 : vector<8x16x128xf32>
    %cst_30 = arith.constant dense<0xFF800000> : vector<8x128xf32>
    %36 = vector.multi_reduction <maximumf>, %35, %cst_30 [1] : vector<8x16x128xf32> to vector<8x128xf32>
    %37 = arith.maximumf %0, %36 : vector<8x128xf32>
    %38 = arith.truncf %37 : vector<8x128xf32> to vector<8x128xbf16>
    %c0_31 = arith.constant 0 : index
    %c0_32 = arith.constant 0 : index
    %39 = vector.load %arg5[%c0_31, %c0_32] : memref<128x128xbf16, #tpu.memory_space<vmem>>, vector<128x128xbf16>
    %cst_33 = arith.constant dense<0.000000e+00> : vector<8x128xf32>
    %40 = tpu.matmul %38, %39, %cst_33 {dimension_numbers = #tpu.dot_dimension_numbers<[1], [0], [0], [1], [0, 0, 1, 1], [], []>} : vector<8x128xbf16>, vector<128x128xbf16>, vector<8x128xf32> -> vector<8x128xf32>
    %c0_34 = arith.constant 0 : index
    %c0_35 = arith.constant 0 : index
    %41 = vector.load %arg6[%c0_34, %c0_35] : memref<1x128xf32, #tpu.memory_space<vmem>>, vector<1x128xf32>
    %42 = vector.broadcast %41 : vector<1x128xf32> to vector<8x128xf32>
    %43 = arith.addf %40, %42 : vector<8x128xf32>
    %44 = arith.negf %43 : vector<8x128xf32>
    %45 = math.exp %44 : vector<8x128xf32>
    %cst_36 = arith.constant 1.000000e+00 : f32
    %46 = vector.broadcast %cst_36 : f32 to vector<8x128xf32>
    %47 = arith.addf %46, %45 : vector<8x128xf32>
    %48 = arith.divf %46, %47 : vector<8x128xf32>
    %c0_37 = arith.constant 0 : index
    %c0_38 = arith.constant 0 : index
    %49 = vector.load %arg7[%c0_37, %c0_38] : memref<8x128xf32, #tpu.memory_space<vmem>>, vector<8x128xf32>
    tpu.vector_store %arg7[%c0_37, %c0_38], %48 {strides = array<i32>} : memref<8x128xf32, #tpu.memory_space<vmem>>, vector<8x128xf32>,
    return
  }
  func.func @transform_0(%arg0: i32) -> (i32, i32, i32) {
    %c0_i32 = arith.constant 0 : i32
    %c0_i32_0 = arith.constant 0 : i32
    %c0_i32_1 = arith.constant 0 : i32
    return %arg0, %c0_i32, %c0_i32_0 : i32, i32, i32
  }
  func.func @transform_1(%arg0: i32) -> (i32, i32, i32) {
    %c0_i32 = arith.constant 0 : i32
    %c0_i32_0 = arith.constant 0 : i32
    %c0_i32_1 = arith.constant 0 : i32
    %c0_i32_2 = arith.constant 0 : i32
    return %c0_i32, %c0_i32_0, %c0_i32_1 : i32, i32, i32
  }
  func.func @transform_2(%arg0: i32) -> (i32, i32) {
    %c0_i32 = arith.constant 0 : i32
    %c0_i32_0 = arith.constant 0 : i32
    %c0_i32_1 = arith.constant 0 : i32
    return %c0_i32, %c0_i32_0 : i32, i32
  }
  func.func @transform_3(%arg0: i32) -> (i32, i32) {
    %c0_i32 = arith.constant 0 : i32
    %c0_i32_0 = arith.constant 0 : i32
    %c0_i32_1 = arith.constant 0 : i32
    return %c0_i32, %c0_i32_0 : i32, i32
  }
  func.func @transform_4(%arg0: i32) -> (i32, i32) {
    %c0_i32 = arith.constant 0 : i32
    %c0_i32_0 = arith.constant 0 : i32
    %c0_i32_1 = arith.constant 0 : i32
    return %c0_i32, %c0_i32_0 : i32, i32
  }
  func.func @transform_5(%arg0: i32) -> (i32, i32) {
    %c0_i32 = arith.constant 0 : i32
    %c0_i32_0 = arith.constant 0 : i32
    %c0_i32_1 = arith.constant 0 : i32
    return %c0_i32, %c0_i32_0 : i32, i32
  }
  func.func @transform_6(%arg0: i32) -> (i32, i32) {
    %c0_i32 = arith.constant 0 : i32
    %c0_i32_0 = arith.constant 0 : i32
    return %arg0, %c0_i32 : i32, i32
  }
}

</mosaic_0001>

<bundles_post_ra>
// kernel: tpu_custom_call.1
= control target key start
LH: loop header
LB: loop body
LE: loop exit
PB: predicated region body
PF: predicated region fallthrough
CT: control target
= control target key end

     0   :  { %11 = vsyncpa [#allocation3], 0  ;;  %s1929_s0 = inlined_call_operand.hbm [shape: bf16[8,24,32], index: 0, kind: input, shape index: {}]   ;;  %s1930_s1 = inlined_call_operand.hbm [shape: bf16[4,32,128], index: 1, kind: input, shape index: {}]   ;;  %s1931_s2 = inlined_call_operand.vmem [shape: f32[1,128], index: 2, kind: input, shape index: {}]   ;;  %s1932_s3 = inlined_call_operand.hbm [shape: f32[16,128], index: 3, kind: input, shape index: {}]   ;;  %s1933_s4 = inlined_call_operand.hbm [shape: bf16[128,128], index: 4, kind: input, shape index: {}]   ;;  %s1934_s5 = inlined_call_operand.vmem [shape: f32[1,128], index: 5, kind: input, shape index: {}]   ;;  %s1935_s6 = inlined_call_operand.hbm [shape: f32[8,128], index: 6, kind: output, shape index: {}]  }
   0x1   :  { %12 = vsyncpa [#allocation6], 0 }
   0x2   :  { %13 = vsyncpa [#allocation9], 0 }
   0x3   :  { %14 = vsyncpa [#allocation4], 0  ;;  %s32_s23 = sshll.u32 %s1930_s1, 4  ;;  %s1671_s24 = smov [#allocation5]   ;;  %s33_s23 = int_to_ptr.hbm [resolvable:$true] %s32_s23 }
   0x4   :  { %s34_s25 = sshll.u32 %s1671_s24, 4  ;;  %s19_s28 = sshll.u32 %s1929_s0, 4  ;;  %s35_s25 = int_to_ptr.vmem [resolvable:$true] %s34_s25  ;;  %s20_s28 = int_to_ptr.hbm [resolvable:$true] %s19_s28 }
   0x5   :  { %s1672_s29 = smov 64   ;;  %s1673_s30 = smov 4  }
   0x6   :  { %40 = dma.hbm_to_vmem [thread:$0]  %s33_s23, 1024, %s35_s25, [#allocation6], %s1672_s29, %s1672_s29, %s1673_s30  }
   0x7   :  { %s1674_s7 = smov [#allocation2]   ;;  %s47_s11 = sshll.u32 %s1932_s3, 4  ;;  %s48_s11 = int_to_ptr.hbm [resolvable:$true] %s47_s11 }
   0x8   :  { %s21_s8 = sshll.u32 %s1674_s7, 4  ;;  %s1675_s1 = smov [#allocation7]   ;;  %s22_s8 = int_to_ptr.vmem [resolvable:$true] %s21_s8 }
   0x9   :  { %27 = dma.hbm_to_vmem [thread:$0]  %s20_s28, 1536, %s22_s8, [#allocation3], %s1672_s29, %s1672_s29, %s1673_s30  }
   0xa   :  { %s49_s12 = sshll.u32 %s1675_s1, 4  ;;  %s60_s0 = sshll.u32 %s1933_s4, 4  ;;  %s50_s12 = int_to_ptr.vmem [resolvable:$true] %s49_s12  ;;  %s61_s0 = int_to_ptr.hbm [resolvable:$true] %s60_s0 }
   0xb   :  { %s1676_s15 = smov 128   ;;  %s1677_s16 = smov 8  }
   0xc   :  { %55 = dma.hbm_to_vmem [thread:$0]  %s48_s11, 256, %s50_s12, [#allocation6], %s1676_s15, %s1676_s15, %s1677_s16  }
   0xd   :  { %s1678_s17 = smov [#allocation8]  }
   0xe   :  { %s62_s18 = sshll.u32 %s1678_s17, 4  ;;  %s63_s18 = int_to_ptr.vmem [resolvable:$true] %s62_s18 }
   0xf   :  { %68 = dma.hbm_to_vmem [thread:$0]  %s61_s0, 1024, %s63_s18, [#allocation9], %s1672_s29, %s1672_s29, %s1673_s30  }
  0x10   :  { %1663 = dma.done.wait [#allocation3], 1536  }
  0x11   :  { %1664 = vsyncadd [#allocation3], 4294965760 }
  0x12   :  { %1665 = dma.done.wait [#allocation6], 1280  }
  0x13   :  { %1666 = vsyncadd [#allocation6], 4294966016 }
  0x14   :  { %1667 = dma.done.wait [#allocation9], 1024  }
  0x15   :  { %1668 = vsyncadd [#allocation9], 4294966272  ;;  %vm575_vm0 = vcmask 1042432   ;;  %vm576_vm1 = vcmask 1046532   ;;  %v1513_v0 = vld [vmem:[#allocation5 + $0x8] sm:$0xff]  ;;  %v1515_v2 = vld [vmem:[#allocation5 + $0x18] sm:$0xff] }
  0x16   :  { %v1517_v1 = vld [vmem:[#allocation5 + $0x28] sm:$0xff]  ;;  %v1512_v3 = vld [vmem:[#allocation5] sm:$0xff]  ;;  %v1519_v4 = vld [vmem:[#allocation5 + $0x38] sm:$0xff]  ;;  %vm116_vm3 = vsmask.f32 3328  ;;  %508 = vmatpush.bf16.msra.mxu1 %v1513_v0  ;;  %vm352_vm5 = vcmask 261120   ;;  %383 = vmatpush.bf16.msra.mxu0 %v1515_v2 }
  0x17   :  { %vm1727_vm2 = vmor %vm575_vm0, %vm576_vm1  ;;  %vm117_vm4 = vsmask.f32 7440  ;;  %705 = vmatpush.bf16.msra.mxu2 %v1517_v1  ;;  %v1516_v6 = vld [vmem:[#allocation5 + $0x20] sm:$0xff]  ;;  %v108_v8 = vld [vmem:[#allocation2 + $0x8] sm:$0x1]  ;;  %1030 = vmatpush.bf16.msra.mxu3 %v1519_v4  ;;  %vm1251_vm10 = vcmask 1041409  }
  0x18   :  { %v89_v7 = vld [vmem:[#allocation2 + $0x4] sm:$0xf]  ;;  %vm772_vm6 = vsmask.f32 2304  ;;  %vm773_vm7 = vsmask.f32 6416  ;;  %vm1740_vm8 = vmor %vm116_vm3, %vm117_vm4 }
  0x19   :  { %v551_v9 = vld [vmem:[#allocation2] sm:$0xe]  ;;  %v580_v10 = vrot.slane %v89_v7, 5  ;;  %v583_v11 = vrot.slane %v108_v8, 5  ;;  %v1514_v12 = vld [vmem:[#allocation5 + $0x10] sm:$0xff]  ;;  %v129_v16 = vshll.u32 %v89_v7, 16  ;;  %vm1752_vm9 = vmor %vm772_vm6, %vm773_vm7 }
  0x1a   :  { %v1518_v13 = vld [vmem:[#allocation5 + $0x30] sm:$0xff]  ;;  %v1431_v14 = vrot.slane %v551_v9, 9  ;;  %v88_v15 = vld [vmem:[#allocation2] sm:$0xf]  ;;  %v133_v17 = vshrl.u32 %v89_v7, 16  ;;  %v139_v18 = vshll.u32 %v108_v8, 16  ;;  %509 = vmatpush.bf16.msra.mxu1 %v1512_v3  ;;  %384 = vmatpush.bf16.msra.mxu0 %v1514_v12 }
  0x1b   :  { %v1504_v19 = vld [vmem:[#allocation2] sm:$0xff]  ;;  %v582_v20 = vrot.slane %v580_v10, 4  ;;  %v120_v21 = vshrl.u32 %v88_v15, 16  ;;  %v123_v22 = vshll.u32 %v88_v15, 16  ;;  %v776_v23 = vshrl.u32 %v551_v9, 16  ;;  %706 = vmatpush.bf16.msra.mxu2 %v1516_v6  ;;  %1031 = vmatpush.bf16.msra.mxu3 %v1518_v13  ;;  %s1679_s20 = smov [#allocation10]  }
  0x1c   :  { %v581_v24 = vsel %vm1727_vm2, %v1431_v14, %v580_v10  ;;  %v131_v25 = vrot.slane %v129_v16, 5  ;;  %v135_v26 = vrot.slane %v133_v17, 4  ;;  %v141_v27 = vrot.slane %v139_v18, 5  ;;  %v764_v28 = vld [vmem:[#allocation2 + $0x8] sm:$0x3]  ;;  %s1353_s21 = sshll.u32 %s1679_s20, 4  ;;  %s1354_s21 = int_to_ptr.vmem [resolvable:$true] %s1353_s21 }
  0x1d   :  { %v584_v29 = vsel %vm1727_vm2, %v582_v20, %v583_v11  ;;  %v639_v30 = vunpack.c.l.b16 %v581_v24  ;;  %v122_v31 = vrot.slane %v120_v21, 4  ;;  %v125_v32 = vrot.slane %v123_v22, 5  ;;  %v1735_v37 = vld [vmem:[#allocation2 + $0x10] sm:$0xf]  ;;  %1423 = vmatmul.msk.bf16.vlgmr.msra.gmra.mxu1 %vm352_vm5, %v1504_v19  ;;  %v109_v43 = vld [vmem:[#allocation2 + $0x14] sm:$0x1] }
  0x1e   :  { %v640_v33 = vunpack.c.l.b16 %v584_v29  ;;  %v136_v34 = vor.u32 %v135_v26, %v131_v25  ;;  %v778_v35 = vrot.slane %v776_v23, 5  ;;  %v779_v36 = vshll.u32 %v551_v9, 16  ;;  %v552_v48 = vld [vmem:[#allocation2 + $0xc] sm:$0xe]  ;;  %v765_v22 = vld [vmem:[#allocation2 + $0x14] sm:$0x3] }
  0x1f   :  { %v126_v39 = vor.u32 %v125_v32, %v122_v31  ;;  %v784_v40 = vrot.slane %v133_v17, 5  ;;  %v785_v41 = vrot.slane %v129_v16, 6  ;;  %v790_v42 = vshrl.u32 %v764_v28, 16  ;;  %v90_v57 = vld [vmem:[#allocation2 + $0xc] sm:$0xf] }
  0x20   :  { %v655_v44 = vpack.c.b16 %v640_v33, %v639_v30  ;;  %v137_v45 = vrot.slane %v136_v34, 4  ;;  %v781_v46 = vrot.slane %v779_v36, 6  ;;  %v793_v47 = vshll.u32 %v764_v28, 16  ;;  %v93_v28 = vld [vmem:[#allocation2 + $0x1c] sm:$0xf]  ;;  %v1505_v29 = vld [vmem:[#allocation2 + $0xc] sm:$0xff] }
  0x21   :  { %v127_v49 = vrot.slane %v126_v39, 4  ;;  %v786_v50 = vor.u32 %v785_v41, %v784_v40  ;;  %v792_v51 = vrot.slane %v790_v42, 5  ;;  %v1432_v52 = vrot.slane %v552_v48, 9  ;;  %v110_v42 = vld [vmem:[#allocation2 + $0x20] sm:$0x1] }
  0x22   :  { %1447 = vmatmul.msk.bf16.vlgmr.msra.gmra.mxu2 %vm352_vm5, %v655_v44  ;;  %v142_v53 = vsel %vm1740_vm8, %v137_v45, %v141_v27  ;;  %v782_v54 = vor.u32 %v781_v46, %v778_v35  ;;  %v795_v55 = vrot.slane %v793_v47, 6  ;;  %v587_v56 = vrot.slane %v1735_v37, 5 }
  0x23   :  { %v132_v58 = vsel %vm1740_vm8, %v127_v49, %v131_v25  ;;  %v317_v59 = vunpack.c.l.b16 %v142_v53  ;;  %v788_v61 = vrot.slane %v786_v50, 4  ;;  %v590_v62 = vrot.slane %v109_v43, 5  ;;  %v92_v49 = vld [vmem:[#allocation2 + $0x18] sm:$0xf] }
  0x24   :  { %v316_v63 = vunpack.c.l.b16 %v132_v58  ;;  %v783_v0 = vrot.slane %v782_v54, 4  ;;  %v796_v1 = vor.u32 %v795_v55, %v792_v51  ;;  %v588_v2 = vsel %vm1727_vm2, %v1432_v52, %v587_v56 }
  0x25   :  { %v589_v3 = vrot.slane %v587_v56, 4  ;;  %v641_v4 = vunpack.c.l.b16 %v588_v2  ;;  %v144_v6 = vshrl.u32 %v90_v57, 16  ;;  %v147_v7 = vshll.u32 %v90_v57, 16 }
  0x26   :  { %v332_v8 = vpack.c.b16 %v317_v59, %v316_v63  ;;  %v787_v9 = vsel %vm1752_vm9, %v783_v0, %v786_v50  ;;  %v797_v10 = vsel %vm1752_vm9, %v788_v61, %v796_v1  ;;  %v153_v11 = vshll.u32 %v1735_v37, 16 }
  0x27   :  { %v964_v12 = vunpack.c.l.b16 %v787_v9  ;;  %v965_v13 = vunpack.c.l.b16 %v797_v10  ;;  %v591_v14 = vsel %vm1727_vm2, %v589_v3, %v590_v62  ;;  %v146_v15 = vrot.slane %v144_v6, 4 }
  0x28   :  { %1375 = vmatmul.msk.bf16.vlgmr.msra.gmra.mxu0 %vm352_vm5, %v332_v8  ;;  %v642_v16 = vunpack.c.l.b16 %v591_v14  ;;  %v149_v17 = vrot.slane %v147_v7, 5  ;;  %v155_v18 = vrot.slane %v153_v11, 5  ;;  %v157_v19 = vshrl.u32 %v1735_v37, 16 }
  0x29   :  { %v980_v20 = vpack.c.b16 %v965_v13, %v964_v12  ;;  %v163_v21 = vshll.u32 %v109_v43, 16  ;;  %v799_v23 = vshrl.u32 %v552_v48, 16  ;;  %v802_v24 = vshll.u32 %v552_v48, 16  ;;  %v553_v43 = vld [vmem:[#allocation2 + $0x18] sm:$0xe] }
  0x2a   :  { %v150_v25 = vor.u32 %v149_v17, %v146_v15  ;;  %v159_v26 = vrot.slane %v157_v19, 4  ;;  %v807_v27 = vrot.slane %v157_v19, 5  ;;  %v808_v33 = vrot.slane %v153_v11, 6  ;;  %v766_v11 = vld [vmem:[#allocation2 + $0x20] sm:$0x3] }
  0x2b   :  { %1463 = vmatmul.msk.bf16.vlgmr.msra.gmra.mxu3 %vm352_vm5, %v980_v20  ;;  %v165_v30 = vrot.slane %v163_v21, 5  ;;  %v801_v31 = vrot.slane %v799_v23, 5  ;;  %v804_v32 = vrot.slane %v802_v24, 6  ;;  %v813_v36 = vshrl.u32 %v765_v22, 16 }
  0x2c   :  { %v151_v34 = vrot.slane %v150_v25, 4  ;;  %v160_v35 = vor.u32 %v159_v26, %v155_v18  ;;  %v816_v37 = vshll.u32 %v765_v22, 16  ;;  %v656_v39 = vpack.c.b16 %v642_v16, %v641_v4  ;;  %v95_v26 = vld [vmem:[#allocation2 + $0x28] sm:$0xf] }
  0x2d   :  { %v805_v40 = vor.u32 %v804_v32, %v801_v31  ;;  %v809_v41 = vor.u32 %v808_v33, %v807_v27  ;;  %v594_v44 = vrot.slane %v93_v28, 5  ;;  %v815_v47 = vrot.slane %v813_v36, 5  ;;  %1424 = vmatmul.msk.bf16.gmra.mxu1 %vm352_vm5, %v1505_v29  ;;  %v1506_v36 = vld [vmem:[#allocation2 + $0x18] sm:$0xff] }
  0x2e   :  { %v156_v45 = vsel %vm1740_vm8, %v151_v34, %v155_v18  ;;  %v161_v46 = vrot.slane %v160_v35, 4  ;;  %v818_v48 = vrot.slane %v816_v37, 6  ;;  %v1433_v52 = vrot.slane %v553_v43, 9  ;;  %v94_v35 = vld [vmem:[#allocation2 + $0x24] sm:$0xf] }
  0x2f   :  { %v806_v50 = vrot.slane %v805_v40, 4  ;;  %v811_v51 = vrot.slane %v809_v41, 4  ;;  %v318_v54 = vunpack.c.l.b16 %v156_v45  ;;  %v596_v56 = vrot.slane %v594_v44, 4  ;;  %v554_v45 = vld [vmem:[#allocation2 + $0x24] sm:$0xe] }
  0x30   :  { %v166_v53 = vsel %vm1740_vm8, %v161_v46, %v165_v30  ;;  %v819_v55 = vor.u32 %v818_v48, %v815_v47  ;;  %v597_v59 = vrot.slane %v110_v42, 5  ;;  %v168_v61 = vshrl.u32 %v92_v49, 16 }
  0x31   :  { %v319_v57 = vunpack.c.l.b16 %v166_v53  ;;  %v810_v58 = vsel %vm1752_vm9, %v806_v50, %v809_v41  ;;  %v171_v0 = vshll.u32 %v92_v49, 16  ;;  %v595_v2 = vsel %vm1727_vm2, %v1433_v52, %v594_v44  ;;  %v111_v44 = vld [vmem:[#allocation2 + $0x2c] sm:$0x1] }
  0x32   :  { %1448 = vmatmul.msk.bf16.gmra.mxu2 %vm352_vm5, %v656_v39  ;;  %v820_v62 = vsel %vm1752_vm9, %v811_v51, %v819_v55  ;;  %v966_v63 = vunpack.c.l.b16 %v810_v58  ;;  %v170_v3 = vrot.slane %v168_v61, 4  ;;  %v177_v7 = vshll.u32 %v93_v28, 16  ;;  %v767_v61 = vld [vmem:[#allocation2 + $0x2c] sm:$0x3] }
  0x33   :  { %v967_v1 = vunpack.c.l.b16 %v820_v62  ;;  %v333_v4 = vpack.c.b16 %v319_v57, %v318_v54  ;;  %v173_v6 = vrot.slane %v171_v0, 5  ;;  %v181_v8 = vshrl.u32 %v93_v28, 16 }
  0x34   :  { %v598_v9 = vsel %vm1727_vm2, %v596_v56, %v597_v59  ;;  %v187_v10 = vshll.u32 %v110_v42, 16  ;;  %v822_v12 = vshrl.u32 %v553_v43, 16  ;;  %v825_v13 = vshll.u32 %v553_v43, 16 }
  0x35   :  { %v981_v14 = vpack.c.b16 %v967_v1, %v966_v63  ;;  %v174_v15 = vor.u32 %v173_v6, %v170_v3  ;;  %v179_v16 = vrot.slane %v177_v7, 5  ;;  %v183_v17 = vrot.slane %v181_v8, 4 }
  0x36   :  { %v824_v18 = vrot.slane %v822_v12, 5  ;;  %v827_v19 = vrot.slane %v825_v13, 6  ;;  %v830_v20 = vrot.slane %v181_v8, 5  ;;  %v831_v21 = vrot.slane %v177_v7, 6 }
  0x37   :  { %v175_v22 = vrot.slane %v174_v15, 4  ;;  %v184_v23 = vor.u32 %v183_v17, %v179_v16  ;;  %v836_v24 = vshrl.u32 %v766_v11, 16  ;;  %v839_v25 = vshll.u32 %v766_v11, 16 }
  0x38   :  { %1376 = vmatmul.msk.bf16.gmra.mxu0 %vm352_vm5, %v333_v4  ;;  %v643_v27 = vunpack.c.l.b16 %v595_v2  ;;  %v189_v28 = vrot.slane %v187_v10, 5  ;;  %v828_v29 = vor.u32 %v827_v19, %v824_v18  ;;  %v832_v30 = vor.u32 %v831_v21, %v830_v20  ;;  %v96_v21 = vld [vmem:[#allocation2 + $0x30] sm:$0xf] }
  0x39   :  { %v644_v31 = vunpack.c.l.b16 %v598_v9  ;;  %v185_v32 = vrot.slane %v184_v23, 4  ;;  %v838_v33 = vrot.slane %v836_v24, 5  ;;  %v841_v34 = vrot.slane %v839_v25, 6 }
  0x3a   :  { %v829_v37 = vrot.slane %v828_v29, 4  ;;  %v834_v39 = vrot.slane %v832_v30, 4  ;;  %v601_v40 = vrot.slane %v95_v26, 5  ;;  %v180_v41 = vsel %vm1740_vm8, %v175_v22, %v179_v16 }
  0x3b   :  { %1464 = vmatmul.msk.bf16.gmra.mxu3 %vm352_vm5, %v981_v14  ;;  %v842_v42 = vor.u32 %v841_v34, %v838_v33  ;;  %v190_v43 = vsel %vm1740_vm8, %v185_v32, %v189_v28  ;;  %v192_v46 = vshrl.u32 %v94_v35, 16  ;;  %v657_v47 = vpack.c.b16 %v644_v31, %v643_v27  ;;  %v97_v28 = vld [vmem:[#allocation2 + $0x34] sm:$0xf]  ;;  %v1507_v34 = vld [vmem:[#allocation2 + $0x24] sm:$0xff] }
  0x3c   :  { %v1434_v48 = vrot.slane %v554_v45, 9  ;;  %v195_v49 = vshll.u32 %v94_v35, 16  ;;  %v320_v50 = vunpack.c.l.b16 %v180_v41  ;;  %v833_v51 = vsel %vm1752_vm9, %v829_v37, %v832_v30  ;;  %v555_v35 = vld [vmem:[#allocation2 + $0x30] sm:$0xe] }
  0x3d   :  { %1425 = vmatmul.msk.bf16.gmra.mxu1 %vm352_vm5, %v1506_v36  ;;  %v843_v52 = vsel %vm1752_vm9, %v834_v39, %v842_v42  ;;  %v603_v53 = vrot.slane %v601_v40, 4  ;;  %v321_v54 = vunpack.c.l.b16 %v190_v43  ;;  %v604_v55 = vrot.slane %v111_v44, 5 }
  0x3e   :  { %v201_v56 = vshll.u32 %v95_v26, 16  ;;  %v205_v57 = vshrl.u32 %v95_v26, 16  ;;  %v194_v58 = vrot.slane %v192_v46, 4  ;;  %v197_v59 = vrot.slane %v195_v49, 5 }
  0x3f   :  { %v845_v62 = vshrl.u32 %v554_v45, 16  ;;  %v848_v63 = vshll.u32 %v554_v45, 16  ;;  %v968_v0 = vunpack.c.l.b16 %v833_v51  ;;  %v969_v1 = vunpack.c.l.b16 %v843_v52 }
  0x40   :  { %v203_v2 = vrot.slane %v201_v56, 5  ;;  %v207_v3 = vrot.slane %v205_v57, 4  ;;  %v853_v7 = vrot.slane %v205_v57, 5  ;;  %v854_v8 = vrot.slane %v201_v56, 6  ;;  %v768_v56 = vld [vmem:[#allocation2 + $0x38] sm:$0x3] }
  0x41   :  { %v847_v4 = vrot.slane %v845_v62, 5  ;;  %v850_v6 = vrot.slane %v848_v63, 6  ;;  %v334_v9 = vpack.c.b16 %v321_v54, %v320_v50  ;;  %v602_v10 = vsel %vm1727_vm2, %v1434_v48, %v601_v40 }
  0x42   :  { %1449 = vmatmul.msk.bf16.gmra.mxu2 %vm352_vm5, %v657_v47  ;;  %v859_v11 = vshrl.u32 %v767_v61, 16  ;;  %v862_v12 = vshll.u32 %v767_v61, 16  ;;  %v605_v13 = vsel %vm1727_vm2, %v603_v53, %v604_v55  ;;  %v198_v14 = vor.u32 %v197_v59, %v194_v58  ;;  %v112_v47 = vld [vmem:[#allocation2 + $0x38] sm:$0x1] }
  0x43   :  { %v208_v15 = vor.u32 %v207_v3, %v203_v2  ;;  %v211_v16 = vshll.u32 %v111_v44, 16  ;;  %v851_v17 = vor.u32 %v850_v6, %v847_v4  ;;  %v855_v18 = vor.u32 %v854_v8, %v853_v7 }
  0x44   :  { %v861_v19 = vrot.slane %v859_v11, 5  ;;  %v864_v20 = vrot.slane %v862_v12, 6  ;;  %v982_v22 = vpack.c.b16 %v969_v1, %v968_v0  ;;  %v645_v23 = vunpack.c.l.b16 %v602_v10 }
  0x45   :  { %v646_v24 = vunpack.c.l.b16 %v605_v13  ;;  %v199_v25 = vrot.slane %v198_v14, 4  ;;  %v209_v26 = vrot.slane %v208_v15, 4  ;;  %v213_v27 = vrot.slane %v211_v16, 5 }
  0x46   :  { %v216_v29 = vshrl.u32 %v96_v21, 16  ;;  %v852_v30 = vrot.slane %v851_v17, 4  ;;  %v857_v31 = vrot.slane %v855_v18, 4  ;;  %v865_v32 = vor.u32 %v864_v20, %v861_v19  ;;  %v98_v19 = vld [vmem:[#allocation2 + $0x3c] sm:$0xf] }
  0x47   :  { %v219_v33 = vshll.u32 %v96_v21, 16  ;;  %v658_v36 = vpack.c.b16 %v646_v24, %v645_v23  ;;  %v608_v37 = vrot.slane %v97_v28, 5  ;;  %v225_v39 = vshll.u32 %v97_v28, 16 }
  0x48   :  { %1377 = vmatmul.msk.bf16.gmra.mxu0 %vm352_vm5, %v334_v9  ;;  %v229_v40 = vshrl.u32 %v97_v28, 16  ;;  %v204_v41 = vsel %vm1740_vm8, %v199_v25, %v203_v2  ;;  %v214_v42 = vsel %vm1740_vm8, %v209_v26, %v213_v27  ;;  %v218_v43 = vrot.slane %v216_v29, 4  ;;  %v1508_v27 = vld [vmem:[#allocation2 + $0x30] sm:$0xff] }
  0x49   :  { %v221_v44 = vrot.slane %v219_v33, 5  ;;  %v856_v45 = vsel %vm1752_vm9, %v852_v30, %v855_v18  ;;  %v866_v46 = vsel %vm1752_vm9, %v857_v31, %v865_v32  ;;  %v868_v48 = vshrl.u32 %v555_v35, 16  ;;  %v99_v18 = vld [vmem:[#allocation2 + $0x40] sm:$0xf]  ;;  %v113_v30 = vld [vmem:[#allocation2 + $0x44] sm:$0x1] }
  0x4a   :  { %v871_v49 = vshll.u32 %v555_v35, 16  ;;  %v227_v50 = vrot.slane %v225_v39, 5  ;;  %v231_v51 = vrot.slane %v229_v40, 4  ;;  %v322_v52 = vunpack.c.l.b16 %v204_v41 }
  0x4b   :  { %1465 = vmatmul.msk.bf16.gmra.mxu3 %vm352_vm5, %v982_v22  ;;  %v323_v53 = vunpack.c.l.b16 %v214_v42  ;;  %v1435_v54 = vrot.slane %v555_v35, 9  ;;  %v610_v55 = vrot.slane %v608_v37, 4  ;;  %v970_v57 = vunpack.c.l.b16 %v856_v45  ;;  %v556_v22 = vld [vmem:[#allocation2 + $0x3c] sm:$0xe] }
  0x4c   :  { %v971_v58 = vunpack.c.l.b16 %v866_v46  ;;  %v611_v59 = vrot.slane %v112_v47, 5  ;;  %v222_v61 = vor.u32 %v221_v44, %v218_v43  ;;  %v870_v62 = vrot.slane %v868_v48, 5  ;;  %v769_v44 = vld [vmem:[#allocation2 + $0x44] sm:$0x3] }
  0x4d   :  { %1426 = vmatmul.msk.bf16.gmra.mxu1 %vm352_vm5, %v1507_v34  ;;  %v873_v63 = vrot.slane %v871_v49, 6  ;;  %v876_v0 = vrot.slane %v229_v40, 5  ;;  %v877_v1 = vrot.slane %v225_v39, 6  ;;  %v232_v2 = vor.u32 %v231_v51, %v227_v50 }
  0x4e   :  { %v235_v3 = vshll.u32 %v112_v47, 16  ;;  %v882_v4 = vshrl.u32 %v768_v56, 16  ;;  %v885_v6 = vshll.u32 %v768_v56, 16  ;;  %v335_v7 = vpack.c.b16 %v323_v53, %v322_v52 }
  0x4f   :  { %v609_v8 = vsel %vm1727_vm2, %v1435_v54, %v608_v37  ;;  %v612_v9 = vsel %vm1727_vm2, %v610_v55, %v611_v59  ;;  %v983_v10 = vpack.c.b16 %v971_v58, %v970_v57  ;;  %v223_v11 = vrot.slane %v222_v61, 4 }
  0x50   :  { %v874_v12 = vor.u32 %v873_v63, %v870_v62  ;;  %v878_v13 = vor.u32 %v877_v1, %v876_v0  ;;  %v233_v14 = vrot.slane %v232_v2, 4  ;;  %v237_v15 = vrot.slane %v235_v3, 5 }
  0x51   :  { %v884_v16 = vrot.slane %v882_v4, 5  ;;  %v887_v17 = vrot.slane %v885_v6, 6  ;;  %v647_v20 = vunpack.c.l.b16 %v609_v8  ;;  %v648_v21 = vunpack.c.l.b16 %v612_v9 }
  0x52   :  { %1450 = vmatmul.msk.bf16.gmra.mxu2 %vm352_vm5, %v658_v36  ;;  %v228_v23 = vsel %vm1740_vm8, %v223_v11, %v227_v50  ;;  %v875_v24 = vrot.slane %v874_v12, 4  ;;  %v880_v25 = vrot.slane %v878_v13, 4  ;;  %v615_v26 = vrot.slane %v99_v18, 5 }
  0x53   :  { %v238_v28 = vsel %vm1740_vm8, %v233_v14, %v237_v15  ;;  %v888_v29 = vor.u32 %v887_v17, %v884_v16  ;;  %v240_v31 = vshrl.u32 %v98_v19, 16  ;;  %v243_v32 = vshll.u32 %v98_v19, 16 }
  0x54   :  { %v249_v33 = vshll.u32 %v99_v18, 16  ;;  %v253_v34 = vshrl.u32 %v99_v18, 16  ;;  %v891_v35 = vshrl.u32 %v556_v22, 16  ;;  %v894_v36 = vshll.u32 %v556_v22, 16 }
  0x55   :  { %v659_v37 = vpack.c.b16 %v648_v21, %v647_v20  ;;  %v1436_v39 = vrot.slane %v556_v22, 9  ;;  %v324_v40 = vunpack.c.l.b16 %v228_v23  ;;  %v325_v41 = vunpack.c.l.b16 %v238_v28  ;;  %v1509_v22 = vld [vmem:[#allocation2 + $0x3c] sm:$0xff]  ;;  %v557_v23 = vld [vmem:[#allocation2 + $0x48] sm:$0xe] }
  0x56   :  { %v617_v42 = vrot.slane %v615_v26, 4  ;;  %v618_v43 = vrot.slane %v113_v30, 5  ;;  %v879_v45 = vsel %vm1752_vm9, %v875_v24, %v878_v13  ;;  %v889_v46 = vsel %vm1752_vm9, %v880_v25, %v888_v29  ;;  %v114_v29 = vld [vmem:[#allocation2 + $0x50] sm:$0x1] }
  0x57   :  { %v242_v47 = vrot.slane %v240_v31, 4  ;;  %v245_v48 = vrot.slane %v243_v32, 5  ;;  %v251_v49 = vrot.slane %v249_v33, 5  ;;  %v255_v50 = vrot.slane %v253_v34, 4 }
  0x58   :  { %1378 = vmatmul.msk.bf16.gmra.mxu0 %vm352_vm5, %v335_v7  ;;  %v893_v51 = vrot.slane %v891_v35, 5  ;;  %v896_v52 = vrot.slane %v894_v36, 6  ;;  %v899_v53 = vrot.slane %v253_v34, 5  ;;  %v900_v54 = vrot.slane %v249_v33, 6  ;;  %v100_v7 = vld [vmem:[#allocation2 + $0x48] sm:$0xf] }
  0x59   :  { %v905_v55 = vshrl.u32 %v769_v44, 16  ;;  %v908_v56 = vshll.u32 %v769_v44, 16  ;;  %v972_v57 = vunpack.c.l.b16 %v879_v45  ;;  %v973_v58 = vunpack.c.l.b16 %v889_v46 }
  0x5a   :  { %v616_v59 = vsel %vm1727_vm2, %v1436_v39, %v615_v26  ;;  %v619_v61 = vsel %vm1727_vm2, %v617_v42, %v618_v43  ;;  %v336_v62 = vpack.c.b16 %v325_v41, %v324_v40  ;;  %v246_v63 = vor.u32 %v245_v48, %v242_v47  ;;  %v770_v42 = vld [vmem:[#allocation2 + $0x50] sm:$0x3] }
  0x5b   :  { %1466 = vmatmul.msk.bf16.gmra.mxu3 %vm352_vm5, %v983_v10  ;;  %v256_v0 = vor.u32 %v255_v50, %v251_v49  ;;  %v259_v1 = vshll.u32 %v113_v30, 16  ;;  %v897_v2 = vor.u32 %v896_v52, %v893_v51  ;;  %v901_v3 = vor.u32 %v900_v54, %v899_v53  ;;  %v101_v10 = vld [vmem:[#allocation2 + $0x4c] sm:$0xf] }
  0x5c   :  { %v907_v4 = vrot.slane %v905_v55, 5  ;;  %v910_v6 = vrot.slane %v908_v56, 6  ;;  %v984_v8 = vpack.c.b16 %v973_v58, %v972_v57  ;;  %v649_v9 = vunpack.c.l.b16 %v616_v59 }
  0x5d   :  { %1427 = vmatmul.msk.bf16.gmra.mxu1 %vm352_vm5, %v1508_v27  ;;  %v650_v11 = vunpack.c.l.b16 %v619_v61  ;;  %v247_v12 = vrot.slane %v246_v63, 4  ;;  %v257_v13 = vrot.slane %v256_v0, 4  ;;  %v261_v14 = vrot.slane %v259_v1, 5 }
  0x5e   :  { %v898_v15 = vrot.slane %v897_v2, 4  ;;  %v903_v16 = vrot.slane %v901_v3, 4  ;;  %v911_v17 = vor.u32 %v910_v6, %v907_v4  ;;  %v264_v18 = vshrl.u32 %v100_v7, 16 }
  0x5f   :  { %v267_v19 = vshll.u32 %v100_v7, 16  ;;  %v273_v20 = vshll.u32 %v101_v10, 16  ;;  %v277_v21 = vshrl.u32 %v101_v10, 16  ;;  %v660_v24 = vpack.c.b16 %v650_v11, %v649_v9  ;;  %v103_v7 = vld [vmem:[#allocation2 + $0x58] sm:$0xf]  ;;  %v1510_v9 = vld [vmem:[#allocation2 + $0x48] sm:$0xff] }
  0x60   :  { %v252_v25 = vsel %vm1740_vm8, %v247_v12, %v251_v49  ;;  %v262_v26 = vsel %vm1740_vm8, %v257_v13, %v261_v14  ;;  %v902_v27 = vsel %vm1752_vm9, %v898_v15, %v901_v3  ;;  %v912_v28 = vsel %vm1752_vm9, %v903_v16, %v911_v17  ;;  %v558_v14 = vld [vmem:[#allocation2 + $0x54] sm:$0xe] }
  0x61   :  { %v622_v30 = vrot.slane %v101_v10, 5  ;;  %v266_v31 = vrot.slane %v264_v18, 4  ;;  %v269_v32 = vrot.slane %v267_v19, 5  ;;  %v275_v33 = vrot.slane %v273_v20, 5 }
  0x62   :  { %1451 = vmatmul.msk.bf16.gmra.mxu2 %vm352_vm5, %v659_v37  ;;  %v279_v34 = vrot.slane %v277_v21, 4  ;;  %v914_v35 = vshrl.u32 %v557_v23, 16  ;;  %v917_v36 = vshll.u32 %v557_v23, 16  ;;  %v326_v37 = vunpack.c.l.b16 %v252_v25  ;;  %v115_v25 = vld [vmem:[#allocation2 + $0x5c] sm:$0x1] }
  0x63   :  { %v327_v39 = vunpack.c.l.b16 %v262_v26  ;;  %v1437_v40 = vrot.slane %v557_v23, 9  ;;  %v625_v41 = vrot.slane %v114_v29, 5  ;;  %v974_v43 = vunpack.c.l.b16 %v902_v27 }
  0x64   :  { %v975_v44 = vunpack.c.l.b16 %v912_v28  ;;  %v624_v45 = vrot.slane %v622_v30, 4  ;;  %v283_v46 = vshll.u32 %v114_v29, 16  ;;  %v270_v47 = vor.u32 %v269_v32, %v266_v31  ;;  %v771_v32 = vld [vmem:[#allocation2 + $0x5c] sm:$0x3] }
  0x65   :  { %v280_v48 = vor.u32 %v279_v34, %v275_v33  ;;  %v916_v49 = vrot.slane %v914_v35, 5  ;;  %v922_v50 = vrot.slane %v277_v21, 5  ;;  %v919_v51 = vrot.slane %v917_v36, 6 }
  0x66   :  { %v923_v52 = vrot.slane %v273_v20, 6  ;;  %v928_v53 = vshrl.u32 %v770_v42, 16  ;;  %v931_v54 = vshll.u32 %v770_v42, 16  ;;  %v337_v55 = vpack.c.b16 %v327_v39, %v326_v37 }
  0x67   :  { %v623_v56 = vsel %vm1727_vm2, %v1437_v40, %v622_v30  ;;  %v626_v57 = vsel %vm1727_vm2, %v624_v45, %v625_v41  ;;  %v985_v58 = vpack.c.b16 %v975_v44, %v974_v43  ;;  %v271_v59 = vrot.slane %v270_v47, 4 }
  0x68   :  { %1379 = vmatmul.msk.bf16.gmra.mxu0 %vm352_vm5, %v336_v62  ;;  %v281_v61 = vrot.slane %v280_v48, 4  ;;  %v285_v62 = vrot.slane %v283_v46, 5  ;;  %v920_v63 = vor.u32 %v919_v51, %v916_v49  ;;  %v924_v0 = vor.u32 %v923_v52, %v922_v50 }
  0x69   :  { %v930_v1 = vrot.slane %v928_v53, 5  ;;  %v933_v2 = vrot.slane %v931_v54, 6  ;;  %v651_v3 = vunpack.c.l.b16 %v623_v56  ;;  %v652_v4 = vunpack.c.l.b16 %v626_v57 }
  0x6a   :  { %v276_v6 = vsel %vm1740_vm8, %v271_v59, %v275_v33  ;;  %v286_v10 = vsel %vm1740_vm8, %v281_v61, %v285_v62  ;;  %v921_v11 = vrot.slane %v920_v63, 4  ;;  %v926_v12 = vrot.slane %v924_v0, 4  ;;  %v1511_v62 = vld [vmem:[#allocation2 + $0x54] sm:$0xff] }
  0x6b   :  { %1467 = vmatmul.msk.bf16.gmra.mxu3 %vm352_vm5, %v984_v8  ;;  %v102_v8 = vld [vmem:[#allocation2 + $0x54] sm:$0xf]  ;;  %v934_v13 = vor.u32 %v933_v2, %v930_v1  ;;  %v297_v17 = vshll.u32 %v103_v7, 16  ;;  %v301_v18 = vshrl.u32 %v103_v7, 16  ;;  %v661_v19 = vpack.c.b16 %v652_v4, %v651_v3 }
  0x6c   :  { %v288_v15 = vshrl.u32 %v102_v8, 16  ;;  %v291_v16 = vshll.u32 %v102_v8, 16  ;;  %v328_v20 = vunpack.c.l.b16 %v276_v6  ;;  %v329_v21 = vunpack.c.l.b16 %v286_v10 }
  0x6d   :  { %1428 = vmatmul.msk.bf16.gmra.mxu1 %vm352_vm5, %v1509_v22  ;;  %v925_v22 = vsel %vm1752_vm9, %v921_v11, %v924_v0  ;;  %v935_v23 = vsel %vm1752_vm9, %v926_v12, %v934_v13  ;;  %v937_v26 = vshrl.u32 %v558_v14, 16  ;;  %v940_v27 = vshll.u32 %v558_v14, 16 }
  0x6e   :  { %v290_v28 = vrot.slane %v288_v15, 4  ;;  %v293_v29 = vrot.slane %v291_v16, 5  ;;  %v299_v30 = vrot.slane %v297_v17, 5  ;;  %v303_v31 = vrot.slane %v301_v18, 4 }
  0x6f   :  { %v338_v33 = vpack.c.b16 %v329_v21, %v328_v20  ;;  %v976_v34 = vunpack.c.l.b16 %v925_v22  ;;  %v977_v35 = vunpack.c.l.b16 %v935_v23  ;;  %v1438_v36 = vrot.slane %v558_v14, 9 }
  0x70   :  { %v632_v39 = vrot.slane %v115_v25, 5  ;;  %v945_v40 = vrot.slane %v301_v18, 5  ;;  %v946_v41 = vrot.slane %v297_v17, 6  ;;  %v939_v42 = vrot.slane %v937_v26, 5 }
  0x71   :  { %v942_v43 = vrot.slane %v940_v27, 6  ;;  %v951_v44 = vshrl.u32 %v771_v32, 16  ;;  %v954_v45 = vshll.u32 %v771_v32, 16  ;;  %v294_v46 = vor.u32 %v293_v29, %v290_v28 }
  0x72   :  { %1452 = vmatmul.msk.bf16.gmra.mxu2 %vm352_vm5, %v660_v24  ;;  %v629_v24 = vrot.slane %v103_v7, 5  ;;  %v304_v47 = vor.u32 %v303_v31, %v299_v30  ;;  %v307_v48 = vshll.u32 %v115_v25, 16  ;;  %v986_v49 = vpack.c.b16 %v977_v35, %v976_v34  ;;  %v1883_v35 = vld [vmem:[#allocation7] sm:$0xff] }
  0x73   :  { %v943_v52 = vor.u32 %v942_v43, %v939_v42  ;;  %v947_v53 = vor.u32 %v946_v41, %v945_v40  ;;  %v953_v54 = vrot.slane %v951_v44, 5  ;;  %v295_v56 = vrot.slane %v294_v46, 4 }
  0x74   :  { %v631_v37 = vrot.slane %v629_v24, 4  ;;  %v630_v50 = vsel %vm1727_vm2, %v1438_v36, %v629_v24  ;;  %v305_v57 = vrot.slane %v304_v47, 4  ;;  %v1879_v24 = vld [vmem:[%s1931_s2] ss:$0 sm:$0xff]  ;;  %v1885_v36 = vld [vmem:[#allocation7 + $0x8] sm:$0xff]  ;;  %vm1253_vm11 = vcmask 1042434  }
  0x75   :  { %v653_v59 = vunpack.c.l.b16 %v630_v50  ;;  %v944_v63 = vrot.slane %v943_v52, 4  ;;  %v949_v0 = vrot.slane %v947_v53, 4  ;;  %v300_v5 = vsel %vm1740_vm8, %v295_v56, %v299_v30  ;;  %v1527_v50 = vld [vmem:[#allocation8 + $0x38] sm:$0xff] }
  0x76   :  { %v633_v51 = vsel %vm1727_vm2, %v631_v37, %v632_v39  ;;  %v330_v4 = vunpack.c.l.b16 %v300_v5  ;;  %1315 = vmatpush.bf16.msrb.mxu0 %v1527_v50  ;;  %v1525_v50 = vld [vmem:[#allocation8 + $0x28] sm:$0xff]  ;;  %vm1255_vm12 = vcmask 1043459   ;;  %vm1257_vm13 = vcmask 1044484  }
  0x77   :  { %v654_v61 = vunpack.c.l.b16 %v633_v51  ;;  %v948_v7 = vsel %vm1752_vm9, %v944_v63, %v947_v53  ;;  %vm1259_vm14 = vcmask 1045509   ;;  %vm1261_vm15 = vcmask 1046534  }
  0x78   :  { %1380 = vmatmul.msk.bf16.gmra.mxu0 %vm352_vm5, %v337_v55  ;;  %v956_v55 = vrot.slane %v954_v45, 6  ;;  %vm1263_vm0 = vcmask 1047559  }
  0x79   :  { %v662_v3 = vpack.c.b16 %v654_v61, %v653_v59 }
  0x7a   :  { %v957_v1 = vor.u32 %v956_v55, %v953_v54 }
  0x7b   :  { %1468 = vmatmul.msk.bf16.gmra.mxu3 %vm352_vm5, %v985_v58  ;;  %v309_v58 = vrot.slane %v307_v48, 5 }
  0x7c   :  { %v958_v8 = vsel %vm1752_vm9, %v949_v0, %v957_v1 }
  0x7d   :  { %1429 = vmatmul.msk.bf16.gmra.mxu1 %vm352_vm5, %v1510_v9  ;;  %v310_v2 = vsel %vm1740_vm8, %v305_v57, %v309_v58  ;;  %v978_v9 = vunpack.c.l.b16 %v948_v7  ;;  %v979_v10 = vunpack.c.l.b16 %v958_v8 }
  0x7e   :  { %v331_v6 = vunpack.c.l.b16 %v310_v2 }
  0x7f   :  { %v987_v12 = vpack.c.b16 %v979_v10, %v978_v9 }
  0x80   :  { %v339_v11 = vpack.c.b16 %v331_v6, %v330_v4 }
  0x82   :  { %1453 = vmatmul.msk.bf16.gmra.mxu2 %vm352_vm5, %v661_v19 }
  0x88   :  { %1381 = vmatmul.msk.bf16.gmra.mxu0 %vm352_vm5, %v338_v33 }
  0x8b   :  { %1469 = vmatmul.msk.bf16.gmra.mxu3 %vm352_vm5, %v986_v49 }
  0x8d   :  { %1430 = vmatmul.msk.bf16.gmra.mxu1 %vm352_vm5, %v1511_v62 }
  0x92   :  { %1454 = vmatmul.msk.bf16.gmra.mxu2 %vm352_vm5, %v662_v3 }
  0x98   :  { %1382 = vmatmul.msk.bf16.gmra.mxu0 %vm352_vm5, %v339_v11 }
  0x9a   :  { %v511_v38 = vpop.f32.mrf.mxu1 }
  0x9b   :  { %1470 = vmatmul.msk.bf16.gmra.mxu3 %vm352_vm5, %v987_v12 }
  0xa2   :  { %v513_v13 = vpop.f32.mrf.mxu1 }
  0xa5   :  { %v386_v14 = vpop.f32.mrf.mxu0  ;;  %v708_v15 = vpop.f32.mrf.mxu2 }
  0xa6   :  { %v512_v16 = vadd.f32 %v511_v38, %v386_v14 }
  0xa8   :  { %v748_v17 = vadd.f32 %v708_v15, %v512_v16 }
  0xaa   :  { %v516_v18 = vpop.f32.mrf.mxu1 }
  0xad   :  { %v388_v19 = vpop.f32.mrf.mxu0  ;;  %v710_v60 = vpop.f32.mrf.mxu2 }
  0xae   :  { %v1033_v20 = vpop.f32.mrf.mxu3  ;;  %v514_v21 = vadd.f32 %v513_v13, %v388_v19  ;;  %v1526_v13 = vld [vmem:[#allocation8 + $0x30] sm:$0xff] }
  0xaf   :  { %v1073_v22 = vadd.f32 %v1033_v20, %v748_v17  ;;  %1316 = vmatpush.bf16.msrb.mxu0 %v1526_v13 }
  0xb0   :  { %v749_v23 = vadd.f32 %v710_v60, %v514_v21 }
  0xb1   :  { %v1093_v26 = vadd.f32 %v1879_v24, %v1073_v22 }
  0xb2   :  { %v518_v25 = vpop.f32.mrf.mxu1 }
  0xb3   :  { %v1109_v33 = vmax.f32 %v1093_v26, 0.0  ;;  %1317 = vmatpush.bf16.msrb.mxu0 %v1525_v50 }
  0xb5   :  { %v391_v27 = vpop.f32.mrf.mxu0  ;;  %v713_v28 = vpop.f32.mrf.mxu2  ;;  %v1127_v40 = vmul.f32 %v1883_v35, %v1109_v33 }
  0xb6   :  { %v1035_v29 = vpop.f32.mrf.mxu3  ;;  %v517_v30 = vadd.f32 %v516_v18, %v391_v27 }
  0xb7   :  { %v1074_v31 = vadd.f32 %v1035_v29, %v749_v23 }
  0xb8   :  { %v750_v32 = vadd.f32 %v713_v28, %v517_v30 }
  0xb9   :  { %v1094_v34 = vadd.f32 %v1879_v24, %v1074_v31 }
  0xba   :  { %v521_v39 = vpop.f32.mrf.mxu1 }
  0xbb   :  { %v1110_v37 = vmax.f32 %v1094_v34, 0.0 }
  0xbd   :  { %v1128_v41 = vmul.f32 %v1885_v36, %v1110_v37  ;;  %v393_v42 = vpop.f32.mrf.mxu0  ;;  %v715_v43 = vpop.f32.mrf.mxu2 }
  0xbe   :  { %v1038_v44 = vpop.f32.mrf.mxu3  ;;  %v519_v45 = vadd.f32 %v518_v25, %v393_v42 }
  0xbf   :  { %v1143_v46 = vmax.f32 %v1127_v40, %v1128_v41  ;;  %v1075_v47 = vadd.f32 %v1038_v44, %v750_v32 }
  0xc0   :  { %v751_v48 = vadd.f32 %v715_v43, %v519_v45 }
  0xc1   :  { %v1144_v49 = vrot.slane %v1143_v46, 4  ;;  %v1095_v53 = vadd.f32 %v1879_v24, %v1075_v47 }
  0xc2   :  { %v523_v51 = vpop.f32.mrf.mxu1 }
  0xc3   :  { %v1145_v52 = vmax.f32 %v1143_v46, %v1144_v49  ;;  %v1111_v62 = vmax.f32 %v1095_v53, 0.0 }
  0xc5   :  { %v396_v54 = vpop.f32.mrf.mxu0  ;;  %v718_v55 = vpop.f32.mrf.mxu2  ;;  %v1146_v61 = vrot.slane %v1145_v52, 2  ;;  %v1129_v2 = vmul.f32 %v1883_v35, %v1111_v62 }
  0xc6   :  { %v1040_v56 = vpop.f32.mrf.mxu3  ;;  %v522_v57 = vadd.f32 %v521_v39, %v396_v54 }
  0xc7   :  { %v1076_v58 = vadd.f32 %v1040_v56, %v751_v48  ;;  %v1147_v5 = vmax.f32 %v1145_v52, %v1146_v61 }
  0xc8   :  { %v752_v59 = vadd.f32 %v718_v55, %v522_v57 }
  0xc9   :  { %v1096_v63 = vadd.f32 %v1879_v24, %v1076_v58  ;;  %v1148_v12 = vrot.slane %v1147_v5, 1 }
  0xca   :  { %v526_v1 = vpop.f32.mrf.mxu1 }
  0xcb   :  { %v1112_v0 = vmax.f32 %v1096_v63, 0.0  ;;  %v1149_v16 = vmax.f32 %v1147_v5, %v1148_v12 }
  0xcd   :  { %v1130_v3 = vmul.f32 %v1885_v36, %v1112_v0  ;;  %v398_v4 = vpop.f32.mrf.mxu0  ;;  %v720_v6 = vpop.f32.mrf.mxu2  ;;  %v1199_v26 = vmax.f32 %v1149_v16, 0.0 }
  0xce   :  { %v1043_v7 = vpop.f32.mrf.mxu3  ;;  %v524_v8 = vadd.f32 %v523_v51, %v398_v4 }
  0xcf   :  { %v1150_v9 = vmax.f32 %v1129_v2, %v1130_v3  ;;  %v1077_v10 = vadd.f32 %v1043_v7, %v752_v59  ;;  %v1207_v33 = vpack.c.bf16 %v1199_v26, %v1199_v26 }
  0xd0   :  { %v753_v11 = vadd.f32 %v720_v6, %v524_v8 }
  0xd1   :  { %v1151_v38 = vrot.slane %v1150_v9, 4  ;;  %v1097_v18 = vadd.f32 %v1879_v24, %v1077_v10  ;;  %v1243_v46 = vunpack.c.l.b16 %v1207_v33 }
  0xd2   :  { %v528_v15 = vpop.f32.mrf.mxu1 }
  0xd3   :  { %v1152_v14 = vmax.f32 %v1150_v9, %v1151_v38  ;;  %v1113_v28 = vmax.f32 %v1097_v18, 0.0 }
  0xd5   :  { %v1153_v17 = vrot.slane %v1152_v14, 2  ;;  %v401_v19 = vpop.f32.mrf.mxu0  ;;  %v723_v60 = vpop.f32.mrf.mxu2  ;;  %v1131_v37 = vmul.f32 %v1883_v35, %v1113_v28  ;;  %v1523_v28 = vld [vmem:[#allocation8 + $0x18] sm:$0xff] }
  0xd6   :  { %v1045_v20 = vpop.f32.mrf.mxu3  ;;  %v527_v21 = vadd.f32 %v526_v1, %v401_v19 }
  0xd7   :  { %v1154_v22 = vmax.f32 %v1152_v14, %v1153_v17  ;;  %v1078_v23 = vadd.f32 %v1045_v20, %v753_v11  ;;  %v1524_v14 = vld [vmem:[#allocation8 + $0x20] sm:$0xff] }
  0xd8   :  { %v754_v25 = vadd.f32 %v723_v60, %v527_v21  ;;  %1318 = vmatpush.bf16.msrb.mxu0 %v1524_v14 }
  0xd9   :  { %v1155_v27 = vrot.slane %v1154_v22, 1  ;;  %v1098_v29 = vadd.f32 %v1879_v24, %v1078_v23 }
  0xda   :  { %v1895_v32 = vpop.f32.mrf.mxu1 }
  0xdb   :  { %v1156_v30 = vmax.f32 %v1154_v22, %v1155_v27  ;;  %v1114_v31 = vmax.f32 %v1098_v29, 0.0 }
  0xdc   :  { %1319 = vmatpush.bf16.msrb.mxu0 %v1523_v28 }
  0xdd   :  { %v1200_v34 = vmax.f32 %v1156_v30, 0.0  ;;  %v1132_v39 = vmul.f32 %v1885_v36, %v1114_v31  ;;  %v403_v40 = vpop.f32.mrf.mxu0  ;;  %v725_v41 = vpop.f32.mrf.mxu2 }
  0xde   :  { %v1048_v42 = vpop.f32.mrf.mxu3  ;;  %v529_v49 = vadd.f32 %v528_v15, %v403_v40 }
  0xdf   :  { %v1208_v43 = vpack.c.bf16 %v1200_v34, %v1200_v34  ;;  %v1157_v44 = vmax.f32 %v1131_v37, %v1132_v39  ;;  %v1079_v45 = vadd.f32 %v1048_v42, %v754_v25 }
  0xe0   :  { %v755_v56 = vadd.f32 %v725_v41, %v529_v49 }
  0xe1   :  { %v1244_v47 = vunpack.c.l.b16 %v1208_v43  ;;  %v1158_v48 = vrot.slane %v1157_v44, 4  ;;  %v1099_v55 = vadd.f32 %v1879_v24, %v1079_v45 }
  0xe2   :  { %v533_v53 = vpop.f32.mrf.mxu1 }
  0xe3   :  { %v1159_v51 = vmax.f32 %v1157_v44, %v1158_v48  ;;  %v1252_v52 = vsel %vm1251_vm10, %v1244_v47, %v1243_v46  ;;  %v1115_v0 = vmax.f32 %v1099_v55, 0.0 }
  0xe5   :  { %v1160_v54 = vrot.slane %v1159_v51, 2  ;;  %v406_v57 = vpop.f32.mrf.mxu0  ;;  %v728_v58 = vpop.f32.mrf.mxu2  ;;  %v1133_v4 = vmul.f32 %v1883_v35, %v1115_v0 }
  0xe6   :  { %v1050_v59 = vpop.f32.mrf.mxu3  ;;  %v532_v33 = vadd.f32 %v1895_v32, %v406_v57 }
  0xe7   :  { %v1161_v61 = vmax.f32 %v1159_v51, %v1160_v54  ;;  %v1080_v62 = vadd.f32 %v1050_v59, %v755_v56 }
  0xe8   :  { %v756_v44 = vadd.f32 %v728_v58, %v532_v33 }
  0xe9   :  { %v1162_v63 = vrot.slane %v1161_v61, 1  ;;  %v1100_v1 = vadd.f32 %v1879_v24, %v1080_v62 }
  0xea   :  { %v536_v10 = vpop.f32.mrf.mxu1 }
  0xeb   :  { %v1163_v5 = vmax.f32 %v1161_v61, %v1162_v63  ;;  %v1116_v2 = vmax.f32 %v1100_v1, 0.0 }
  0xed   :  { %v1201_v3 = vmax.f32 %v1163_v5, 0.0  ;;  %v1134_v6 = vmul.f32 %v1885_v36, %v1116_v2  ;;  %v408_v7 = vpop.f32.mrf.mxu0  ;;  %v730_v8 = vpop.f32.mrf.mxu2 }
  0xee   :  { %v1053_v9 = vpop.f32.mrf.mxu3  ;;  %v534_v34 = vadd.f32 %v533_v53, %v408_v7 }
  0xef   :  { %v1209_v11 = vpack.c.bf16 %v1201_v3, %v1201_v3  ;;  %v1164_v12 = vmax.f32 %v1133_v4, %v1134_v6  ;;  %v1081_v54 = vadd.f32 %v1053_v9, %v756_v44 }
  0xf0   :  { %v757_v45 = vadd.f32 %v730_v8, %v534_v34 }
  0xf1   :  { %v1245_v38 = vunpack.c.l.b16 %v1209_v11  ;;  %v1165_v13 = vrot.slane %v1164_v12, 4  ;;  %v1101_v58 = vadd.f32 %v1879_v24, %v1081_v54 }
  0xf2   :  { %v538_v21 = vpop.f32.mrf.mxu1 }
  0xf3   :  { %v1166_v15 = vmax.f32 %v1164_v12, %v1165_v13  ;;  %v1254_v16 = vsel %vm1253_vm11, %v1245_v38, %v1252_v52  ;;  %v1522_v52 = vld [vmem:[#allocation8 + $0x10] sm:$0xff]  ;;  %v1117_v3 = vmax.f32 %v1101_v58, 0.0 }
  0xf4   :  { %1320 = vmatpush.bf16.msrb.mxu0 %v1522_v52 }
  0xf5   :  { %v1167_v17 = vrot.slane %v1166_v15, 2  ;;  %v411_v18 = vpop.f32.mrf.mxu0  ;;  %v733_v19 = vpop.f32.mrf.mxu2  ;;  %v1135_v11 = vmul.f32 %v1883_v35, %v1117_v3 }
  0xf6   :  { %v1055_v60 = vpop.f32.mrf.mxu3  ;;  %v537_v39 = vadd.f32 %v536_v10, %v411_v18 }
  0xf7   :  { %v1168_v20 = vmax.f32 %v1166_v15, %v1167_v17  ;;  %v1082_v49 = vadd.f32 %v1055_v60, %v757_v45  ;;  %v1521_v15 = vld [vmem:[#allocation8 + $0x8] sm:$0xff] }
  0xf8   :  { %v758_v47 = vadd.f32 %v733_v19, %v537_v39  ;;  %1321 = vmatpush.bf16.msrb.mxu0 %v1521_v15 }
  0xf9   :  { %v1169_v22 = vrot.slane %v1168_v20, 1  ;;  %v1102_v32 = vadd.f32 %v1879_v24, %v1082_v49 }
  0xfa   :  { %v541_v37 = vpop.f32.mrf.mxu1 }
  0xfb   :  { %v1170_v23 = vmax.f32 %v1168_v20, %v1169_v22  ;;  %v1118_v0 = vmax.f32 %v1102_v32, 0.0 }
  0xfd   :  { %v1202_v25 = vmax.f32 %v1170_v23, 0.0  ;;  %v413_v26 = vpop.f32.mrf.mxu0  ;;  %v735_v27 = vpop.f32.mrf.mxu2  ;;  %v1136_v6 = vmul.f32 %v1885_v36, %v1118_v0 }
  0xfe   :  { %v1058_v29 = vpop.f32.mrf.mxu3  ;;  %v539_v40 = vadd.f32 %v538_v21, %v413_v26  ;;  %v1520_v21 = vld [vmem:[#allocation8] sm:$0xff] }
  0xff   :  { %v1210_v30 = vpack.c.bf16 %v1202_v25, %v1202_v25  ;;  %v1083_v55 = vadd.f32 %v1058_v29, %v758_v47  ;;  %1322 = vmatpush.bf16.msrb.mxu0 %v1520_v21  ;;  %v1538_v21 = vld [vmem:[%s1934_s5] ss:$0 sm:$0xff]  ;;  %s1355_s5 = sshll.u32 %s1935_s6, 4  ;;  %s1356_s5 = int_to_ptr.hbm [resolvable:$true] %s1355_s5 }
 0x100   :  { %v759_v48 = vadd.f32 %v735_v27, %v539_v40 }
 0x101   :  { %v1246_v31 = vunpack.c.l.b16 %v1210_v30  ;;  %v1103_v63 = vadd.f32 %v1879_v24, %v1083_v55 }
 0x102   :  { %v543_v53 = vpop.f32.mrf.mxu1 }
 0x103   :  { %v1904_v41 = vsel %vm1255_vm12, %v1246_v31, %v1254_v16  ;;  %v1119_v4 = vmax.f32 %v1103_v63, 0.0  ;;  %v1171_v16 = vmax.f32 %v1135_v11, %v1136_v6 }
 0x105   :  { %v416_v42 = vpop.f32.mrf.mxu0  ;;  %v738_v43 = vpop.f32.mrf.mxu2  ;;  %v1137_v13 = vmul.f32 %v1883_v35, %v1119_v4  ;;  %v1172_v23 = vrot.slane %v1171_v16, 4 }
 0x106   :  { %v1060_v46 = vpop.f32.mrf.mxu3  ;;  %v542_v51 = vadd.f32 %v541_v37, %v416_v42 }
 0x107   :  { %v1084_v50 = vadd.f32 %v1060_v46, %v759_v48  ;;  %v1173_v33 = vmax.f32 %v1171_v16, %v1172_v23 }
 0x108   :  { %v760_v57 = vadd.f32 %v738_v43, %v542_v51 }
 0x109   :  { %v1104_v56 = vadd.f32 %v1879_v24, %v1084_v50  ;;  %v1174_v45 = vrot.slane %v1173_v33, 2 }
 0x10a   :  { %v546_v12 = vpop.f32.mrf.mxu1 }
 0x10b   :  { %v1120_v1 = vmax.f32 %v1104_v56, 0.0  ;;  %v1175_v52 = vmax.f32 %v1173_v33, %v1174_v45 }
 0x10d   :  { %v418_v59 = vpop.f32.mrf.mxu0  ;;  %v740_v62 = vpop.f32.mrf.mxu2  ;;  %v1138_v7 = vmul.f32 %v1885_v36, %v1120_v1 }
 0x10e   :  { %v1063_v61 = vpop.f32.mrf.mxu3  ;;  %v544_v2 = vadd.f32 %v543_v53, %v418_v59 }
 0x10f   :  { %v1085_v5 = vadd.f32 %v1063_v61, %v760_v57  ;;  %v1178_v18 = vmax.f32 %v1137_v13, %v1138_v7  ;;  %v1176_v57 = vrot.slane %v1175_v52, 1 }
 0x110   :  { %v761_v9 = vadd.f32 %v740_v62, %v544_v2 }
 0x111   :  { %v1105_v8 = vadd.f32 %v1879_v24, %v1085_v5  ;;  %v1179_v25 = vrot.slane %v1178_v18, 4  ;;  %v1177_v0 = vmax.f32 %v1175_v52, %v1176_v57 }
 0x112   :  { %v548_v34 = vpop.f32.mrf.mxu1 }
 0x113   :  { %v1121_v19 = vmax.f32 %v1105_v8, 0.0  ;;  %v1180_v37 = vmax.f32 %v1178_v18, %v1179_v25  ;;  %v1203_v4 = vmax.f32 %v1177_v0, 0.0 }
 0x115   :  { %v421_v10 = vpop.f32.mrf.mxu0  ;;  %v743_v17 = vpop.f32.mrf.mxu2  ;;  %v1139_v26 = vmul.f32 %v1883_v35, %v1121_v19  ;;  %v1181_v46 = vrot.slane %v1180_v37, 2 }
 0x116   :  { %v1065_v38 = vpop.f32.mrf.mxu3  ;;  %v547_v20 = vadd.f32 %v546_v12, %v421_v10 }
 0x117   :  { %v1086_v14 = vadd.f32 %v1065_v38, %v761_v9  ;;  %v1182_v54 = vmax.f32 %v1180_v37, %v1181_v46  ;;  %v1211_v9 = vpack.c.bf16 %v1203_v4, %v1203_v4 }
 0x118   :  { %v762_v28 = vadd.f32 %v743_v17, %v547_v20 }
 0x119   :  { %v1106_v60 = vadd.f32 %v1879_v24, %v1086_v14  ;;  %v1183_v59 = vrot.slane %v1182_v54, 1 }
 0x11b   :  { %v1122_v22 = vmax.f32 %v1106_v60, 0.0  ;;  %v1184_v1 = vmax.f32 %v1182_v54, %v1183_v59 }
 0x11d   :  { %v1140_v27 = vmul.f32 %v1885_v36, %v1122_v22  ;;  %v423_v30 = vpop.f32.mrf.mxu0  ;;  %v745_v43 = vpop.f32.mrf.mxu2  ;;  %v1204_v6 = vmax.f32 %v1184_v1, 0.0 }
 0x11e   :  { %v1068_v29 = vpop.f32.mrf.mxu3  ;;  %v549_v42 = vadd.f32 %v548_v34, %v423_v30 }
 0x11f   :  { %v1185_v31 = vmax.f32 %v1139_v26, %v1140_v27  ;;  %v1087_v40 = vadd.f32 %v1068_v29, %v762_v28  ;;  %v1212_v11 = vpack.c.bf16 %v1204_v6, %v1204_v6 }
 0x120   :  { %v763_v48 = vadd.f32 %v745_v43, %v549_v42 }
 0x121   :  { %v1186_v39 = vrot.slane %v1185_v31, 4  ;;  %v1107_v47 = vadd.f32 %v1879_v24, %v1087_v40 }
 0x123   :  { %v1187_v44 = vmax.f32 %v1185_v31, %v1186_v39  ;;  %v1123_v55 = vmax.f32 %v1107_v47, 0.0 }
 0x125   :  { %v1188_v49 = vrot.slane %v1187_v44, 2  ;;  %v1141_v58 = vmul.f32 %v1883_v35, %v1123_v55  ;;  %v1247_v35 = vunpack.c.l.b16 %v1211_v9 }
 0x126   :  { %v1070_v50 = vpop.f32.mrf.mxu3 }
 0x127   :  { %v1088_v51 = vadd.f32 %v1070_v50, %v763_v48  ;;  %v1189_v53 = vmax.f32 %v1187_v44, %v1188_v49  ;;  %v1258_v16 = vsel %vm1257_vm13, %v1247_v35, %v1904_v41 }
 0x129   :  { %v1108_v32 = vadd.f32 %v1879_v24, %v1088_v51  ;;  %v1190_v62 = vrot.slane %v1189_v53, 1 }
 0x12b   :  { %v1124_v56 = vmax.f32 %v1108_v32, 0.0  ;;  %v1191_v2 = vmax.f32 %v1189_v53, %v1190_v62 }
 0x12d   :  { %v1142_v61 = vmul.f32 %v1885_v36, %v1124_v56  ;;  %v1205_v8 = vmax.f32 %v1191_v2, 0.0  ;;  %v1248_v36 = vunpack.c.l.b16 %v1212_v11 }
 0x12f   :  { %v1192_v63 = vmax.f32 %v1141_v58, %v1142_v61  ;;  %v1213_v12 = vpack.c.bf16 %v1205_v8, %v1205_v8  ;;  %v1260_v18 = vsel %vm1259_vm14, %v1248_v36, %v1258_v16 }
 0x131   :  { %v1193_v5 = vrot.slane %v1192_v63, 4  ;;  %v1249_v14 = vunpack.c.l.b16 %v1213_v12 }
 0x133   :  { %v1194_v3 = vmax.f32 %v1192_v63, %v1193_v5  ;;  %v1262_v19 = vsel %vm1261_vm15, %v1249_v14, %v1260_v18 }
 0x135   :  { %v1195_v7 = vrot.slane %v1194_v3, 2 }
 0x137   :  { %v1196_v24 = vmax.f32 %v1194_v3, %v1195_v7 }
 0x139   :  { %v1197_v10 = vrot.slane %v1196_v24, 1 }
 0x13b   :  { %v1198_v38 = vmax.f32 %v1196_v24, %v1197_v10 }
 0x13d   :  { %v1206_v13 = vmax.f32 %v1198_v38, 0.0 }
 0x13f   :  { %v1214_v15 = vpack.c.bf16 %v1206_v13, %v1206_v13 }
 0x141   :  { %v1250_v17 = vunpack.c.l.b16 %v1214_v15 }
 0x143   :  { %v1264_v60 = vsel %vm1263_vm0, %v1250_v17, %v1262_v19 }
 0x144   :  { %v1265_v20 = vpack.c.b16 %v1264_v60, %v1264_v60 }
 0x146   :  { %1323 = vmatmul.bf16.vlgmr.msrb.gmra.mxu0 %v1265_v20 }
 0x1c3   :  { %v1324_v22 = vpop.f32.mrf.mxu0 }
 0x1c4   :  { %v1325_v23 = vadd.f32 %v1538_v21, %v1324_v22 }
 0x1c6   :  { %v1503_v25 = vmul.f32 -1.442695, %v1325_v23 }
 0x1c8   :  { %1539 = vpow2.f32 %v1503_v25 }
 0x1cb   :  { %v1326_v26 = vpop.f32.mrf.mxu0 }
 0x1ce   :  { %v1540_v27 = vpop.eup %1539 }
 0x1cf   :  { %v1331_v28 = vadd.f32 1.0, %v1540_v27 }
 0x1d1   :  { %1541 = vrcp.f32 %v1331_v28  ;;  %v1343_v31 = vand.u32 2147483648, %v1331_v28  ;;  %v1341_v34 = vand.u32 2147483647, %v1331_v28  ;;  %vm1337_vm2 = vweird.f32 %v1331_v28 }
 0x1d3   :  { %v1344_v39 = vor.u32 1.1754944e-38, %v1343_v31  ;;  %vm1342_vm4 = vcmp.eq.f32.partialorder %v1341_v34, 8.507059e+37 }
 0x1d7   :  { %v1542_v41 = vpop.eup %1541 }
 0x1d8   :  { %v1333_v29 = vmul.f32 %v1542_v41, %v1331_v28  ;;  %vm1338_vm1 = vweird.f32 %v1542_v41 }
 0x1d9   :  { %vm1339_vm3 = vmor %vm1337_vm2, %vm1338_vm1 }
 0x1da   :  { %v1334_v30 = vsub.f32 1.0, %v1333_v29 }
 0x1dc   :  { %v1335_v33 = vmul.f32 %v1542_v41, %v1334_v30 }
 0x1de   :  { %v1336_v37 = vadd.f32 %v1542_v41, %v1335_v33 }
 0x1e0   :  { %v1340_v40 = vsel %vm1339_vm3, %v1542_v41, %v1336_v37 }
 0x1e1   :  { %v1345_v42 = vsel %vm1342_vm4, %v1344_v39, %v1340_v40 }
 0x1e2   :  { %1347 = vst [vmem:[#allocation10] sm:$0xff] %v1345_v42 }
 0x1e3   :  { %1358 = dma.vmem_to_hbm [thread:$0]  %s1354_s21, 128, %s1356_s5, [#allocation4]  }
 0x1e4   :  { %1669 = dma.done.wait [#allocation4], 128  }
 0x1e5   :  { %1670 = vsyncadd [#allocation4], 4294967168 }
 0x1e6   :  { %1363 = vsyncpa [#allocation3], 1 }
 0x1e7   :  { %1364 = vsyncpa [#allocation6], 1 }
 0x1e8   :  { %1365 = vsyncpa [#allocation9], 1 }
 0x1e9   :  { %1366 = vsyncpa [#allocation4], 1 }

</bundles_post_ra>
